<compile_context>
chip_gen: v7x
topology: tpu7x:2x2x1
jax: 0.10.0
libtpu: 0.0.40
codegen_flags: <defaults>
</compile_context>

<pallas_src>
import functools

import jax
import jax.numpy as jnp
from jax import lax
from jax.experimental import pallas as pl
from jax.experimental.pallas import tpu as pltpu


# ----------------------------------------------------------------------------
# Kernel A: per-item news encoder (grid over items, "parallel")
#   one grid step = one news item:
#     one-hot token gather -> (T, D) token embeddings
#     additive attention pooling over T (per-item max, exact softmax) -> (1, D)
# ----------------------------------------------------------------------------
def _news_item_kernel(tok_ref, wemb_ref, wp_ref, bp_ref, q_ref, out_ref, *, vocab):
    t_len = tok_ref.shape[0]
    tok = tok_ref[...]                                            # (T, 1) int32
    vocab_iota = lax.broadcasted_iota(jnp.int32, (t_len, vocab), 1)
    onehot = (tok == vocab_iota).astype(jnp.float32)              # (T, V)
    # TODO(synk): production vocab -> scalar-prefetch / DMA row gather instead
    #             of the one-hot MXU gather below.
    x = jnp.dot(onehot, wemb_ref[...], preferred_element_type=jnp.float32)    # (T, D)

    h = jnp.tanh(
        jnp.dot(x, wp_ref[...], preferred_element_type=jnp.float32) + bp_ref[...]
    )                                                             # (T, Q)
    s = jnp.sum(h * q_ref[...], axis=-1, keepdims=True)           # (T, 1)
    s = s - jnp.max(s, axis=0, keepdims=True)                     # per-group max
    e = jnp.exp(s)
    a = e / jnp.sum(e, axis=0, keepdims=True)                     # exact softmax
    out_ref[...] = jnp.sum(a * x, axis=0, keepdims=True)          # (1, D)


def news_encoder(tok_ids, word_emb, wp, bp, q):
    n_items, t_len = tok_ids.shape
    vocab, d = word_emb.shape
    qdim = wp.shape[1]
    kernel = functools.partial(_news_item_kernel, vocab=vocab)
    out3 = pl.pallas_call(
        kernel,
        out_shape=jax.ShapeDtypeStruct((n_items, 1, d), jnp.float32),
        grid=(n_items,),
        in_specs=[
            pl.BlockSpec((None, t_len, 1), lambda i: (i, 0, 0)),   # this item's tokens
            pl.BlockSpec((vocab, d), lambda i: (0, 0)),            # word embedding (resident)
            pl.BlockSpec((d, qdim), lambda i: (0, 0)),
            pl.BlockSpec((1, qdim), lambda i: (0, 0)),
            pl.BlockSpec((1, qdim), lambda i: (0, 0)),
        ],
        out_specs=pl.BlockSpec((None, 1, d), lambda i: (i, 0, 0)),
        compiler_params=pltpu.CompilerParams(dimension_semantics=("parallel",)),
    )(
        tok_ids.reshape(n_items, t_len, 1),
        word_emb,
        wp,
        bp.reshape(1, qdim),
        q.reshape(1, qdim),
    )
    return out3.reshape(n_items, d)


# ----------------------------------------------------------------------------
# Kernel B: fused tail (single launch, grid=(1,))
#   sentiment encoder for all items, both user-encoder poolings, all cosine
#   similarities + loss_orth, and both click-score tensors.  Sentiment / user
#   vectors stay entirely in VMEM.
# ----------------------------------------------------------------------------
def _tail_kernel(news_ref, sid_ref, semb_ref, sw_ref, sb_ref,
                 uwp_ref, ubp_ref, uq_ref,
                 free_ref, comb_ref, loss_ref,
                 *, n_hist, n_cand, batch_size, hist_per_user, cand_per_user,
                 num_sent_classes):
    n_items = n_hist + n_cand
    nv = news_ref[...]                                            # (N_items, D)
    clicked_news = nv[0:n_hist, :]
    cand_news = nv[n_hist:n_items, :]

    # --- sentiment encoder: one-hot embedding lookup -> linear -> tanh -------
    sid = sid_ref[...]                                            # (N_items, 1) int32
    soh = (sid == lax.broadcasted_iota(jnp.int32, (n_items, num_sent_classes), 1)
           ).astype(jnp.float32)                                  # (N_items, C)
    s_emb = jnp.dot(soh, semb_ref[...], preferred_element_type=jnp.float32)   # (N_items, S)
    sv = jnp.tanh(
        jnp.dot(s_emb, sw_ref[...], preferred_element_type=jnp.float32) + sb_ref[...]
    )                                                             # (N_items, D)
    clicked_senti = sv[0:n_hist, :]
    cand_senti = sv[n_hist:n_items, :]

    # --- user encoder (bias-free over news, bias-aware over sentiment) -------
    # single MXU matmul for both variants; cheap per-group softmax afterwards.
    u_in = jnp.concatenate([clicked_news, clicked_senti], axis=0)  # (2*n_hist, D)
    h = jnp.tanh(
        jnp.dot(u_in, uwp_ref[...], preferred_element_type=jnp.float32) + ubp_ref[...]
    )                                                             # (2*n_hist, Q)
    s = jnp.sum(h * uq_ref[...], axis=-1, keepdims=True)          # (2*n_hist, 1)
    pooled = []
    # TODO(synk): at production batch sizes tile this static group loop with a
    #             ("parallel",) grid instead of tracing it per group.
    for g in range(2 * batch_size):
        lo = g * hist_per_user
        hi = lo + hist_per_user
        sg = s[lo:hi, :]
        xg = u_in[lo:hi, :]
        eg = jnp.exp(sg - jnp.max(sg, axis=0, keepdims=True))     # per-group max
        ag = eg / jnp.sum(eg, axis=0, keepdims=True)              # exact softmax
        pooled.append(jnp.sum(ag * xg, axis=0, keepdims=True))    # (1, D)
    user_vec = jnp.concatenate(pooled, axis=0)                    # (2B, D)
    user_free = user_vec[0:batch_size, :]
    user_aware = user_vec[batch_size:2 * batch_size, :]

    # --- orthogonality losses: row-wise cosines (lane reduce, EUP reciprocal)
    def cos_rows(a, b):
        dot = jnp.sum(a * b, axis=-1, keepdims=True)
        na = jnp.sqrt(jnp.sum(a * a, axis=-1, keepdims=True))
        nb = jnp.sqrt(jnp.sum(b * b, axis=-1, keepdims=True))
        return dot * pl.reciprocal(1e-8 + na * nb, approx=True)

    cos_hist = cos_rows(clicked_news, clicked_senti)              # (n_hist, 1)
    cos_cand = cos_rows(cand_news, cand_senti)                    # (n_cand, 1)
    cos_user = cos_rows(user_free, user_aware)                    # (B, 1)
    loss_ref[...] = (
        jnp.abs(jnp.mean(cos_hist, axis=0, keepdims=True))
        + jnp.abs(jnp.mean(cos_cand, axis=0, keepdims=True))
        + jnp.mean(jnp.abs(cos_user), axis=0, keepdims=True)
    )                                                             # (1, 1)

    # --- click predictors: per-(user, candidate) dot products ----------------
    # user rows selected by static slices -- no jnp.repeat / HBM expansion.
    free_cols = []
    aware_cols = []
    for b in range(batch_size):
        lo = b * cand_per_user
        hi = lo + cand_per_user
        uf = user_free[b:b + 1, :]                                # (1, D)
        ua = user_aware[b:b + 1, :]
        free_cols.append(jnp.sum(uf * cand_news[lo:hi, :], axis=-1, keepdims=True))
        aware_cols.append(jnp.sum(ua * cand_senti[lo:hi, :], axis=-1, keepdims=True))
    free_col = jnp.concatenate(free_cols, axis=0)                 # (n_cand, 1)
    aware_col = jnp.concatenate(aware_cols, axis=0)               # (n_cand, 1)
    free_ref[...] = free_col
    comb_ref[...] = free_col + aware_col


def tail_fused(news_vec, sent_ids, sent_emb, sent_w, sent_b,
               user_wp, user_bp, user_q,
               batch_size, hist_per_user, cand_per_user):
    n_items, d = news_vec.shape
    n_hist = batch_size * hist_per_user
    n_cand = batch_size * cand_per_user
    num_sent_classes, sent_dim = sent_emb.shape
    qdim = user_wp.shape[1]

    kernel = functools.partial(
        _tail_kernel,
        n_hist=n_hist, n_cand=n_cand, batch_size=batch_size,
        hist_per_user=hist_per_user, cand_per_user=cand_per_user,
        num_sent_classes=num_sent_classes,
    )
    free_col, comb_col, loss = pl.pallas_call(
        kernel,
        out_shape=(
            jax.ShapeDtypeStruct((n_cand, 1), jnp.float32),
            jax.ShapeDtypeStruct((n_cand, 1), jnp.float32),
            jax.ShapeDtypeStruct((1, 1), jnp.float32),
        ),
        grid=(1,),
        in_specs=[
            pl.BlockSpec((n_items, d), lambda i: (0, 0)),
            pl.BlockSpec((n_items, 1), lambda i: (0, 0)),
            pl.BlockSpec((num_sent_classes, sent_dim), lambda i: (0, 0)),
            pl.BlockSpec((sent_dim, d), lambda i: (0, 0)),
            pl.BlockSpec((1, d), lambda i: (0, 0)),
            pl.BlockSpec((d, qdim), lambda i: (0, 0)),
            pl.BlockSpec((1, qdim), lambda i: (0, 0)),
            pl.BlockSpec((1, qdim), lambda i: (0, 0)),
        ],
        out_specs=(
            pl.BlockSpec((n_cand, 1), lambda i: (0, 0)),
            pl.BlockSpec((n_cand, 1), lambda i: (0, 0)),
            pl.BlockSpec((1, 1), lambda i: (0, 0)),
        ),
    )(
        news_vec,
        sent_ids.reshape(n_items, 1),
        sent_emb,
        sent_w,
        sent_b.reshape(1, d),
        user_wp,
        user_bp.reshape(1, qdim),
        user_q.reshape(1, qdim),
    )
    # tiny metadata reshapes in glue (DotProduct squeezes the singleton dim)
    return (
        free_col.reshape(batch_size, cand_per_user),
        comb_col.reshape(batch_size, cand_per_user),
        loss[0, 0],
    )


# ----------------------------------------------------------------------------
# Generator forward (only id concatenation / final slicing is XLA glue)
# ----------------------------------------------------------------------------
def generator_forward(params, batch):
    bsz = batch["batch_size"]
    hist_per = batch["hist_per_user"]
    cand_per = batch["cand_per_user"]
    n_hist = bsz * hist_per

    # hist + cand items fused into ONE news-encoder launch (parallel grid)
    tokens_all = jnp.concatenate([batch["x_hist_text"], batch["x_cand_text"]], axis=0)
    news_vec_all = news_encoder(
        tokens_all, params["word_emb"],
        params["news_wp"], params["news_bp"], params["news_q"],
    )                                                             # (N_items, D)
    clicked_news_vector = news_vec_all[:n_hist]
    candidate_news_vector = news_vec_all[n_hist:]

    # everything else -- sentiment encoder, user encoders, cosines/loss, scores
    # -- in ONE fused launch.
    sent_all = jnp.concatenate(
        [batch["x_hist_sentiment"], batch["x_cand_sentiment"]], axis=0
    )
    bias_free_scores, combined_scores, loss_orth = tail_fused(
        news_vec_all, sent_all,
        params["sent_emb"], params["sent_w"], params["sent_b"],
        params["user_wp"], params["user_bp"], params["user_q"],
        bsz, hist_per, cand_per,
    )

    return (
        combined_scores,
        bias_free_scores,
        loss_orth,
        clicked_news_vector,
        candidate_news_vector,
    )


# ----------------------------------------------------------------------------
# Deterministic parameter / input construction
# ----------------------------------------------------------------------------
def make_params(key, vocab, text_dim, query_dim, num_sent_classes, sent_dim):
    ks = jax.random.split(key, 10)
    scale = 0.1
    sent_emb = scale * jax.random.normal(ks[0], (num_sent_classes, sent_dim), jnp.float32)
    sent_emb = sent_emb.at[0].set(0.0)  # padding_idx=0
    return {
        "word_emb": scale * jax.random.normal(ks[1], (vocab, text_dim), jnp.float32),
        "news_wp": scale * jax.random.normal(ks[2], (text_dim, query_dim), jnp.float32),
        "news_bp": scale * jax.random.normal(ks[3], (query_dim,), jnp.float32),
        "news_q": scale * jax.random.normal(ks[4], (query_dim,), jnp.float32),
        "user_wp": scale * jax.random.normal(ks[5], (text_dim, query_dim), jnp.float32),
        "user_bp": scale * jax.random.normal(ks[6], (query_dim,), jnp.float32),
        "user_q": scale * jax.random.normal(ks[7], (query_dim,), jnp.float32),
        "sent_emb": sent_emb,
        "sent_w": scale * jax.random.normal(ks[8], (sent_dim, text_dim), jnp.float32),
        "sent_b": scale * jax.random.normal(ks[9], (text_dim,), jnp.float32),
    }


if __name__ == "__main__":
    B = 2          # users in batch
    HIST = 4       # clicked news per user  (equal counts -> to_dense_batch == reshape)
    CAND = 3       # candidate news per user
    T = 8          # tokens per news item
    D = 32         # text_embedding_dim
    Q = 16         # query_vector_dim
    NUM_SENT = 5   # num_sent_classes
    SENT_DIM = 16  # sent_embedding_dim
    VOCAB = 50

    key = jax.random.PRNGKey(0)
    k_params, k_ht, k_ct, k_hs, k_cs = jax.random.split(key, 5)

    params = make_params(k_params, VOCAB, D, Q, NUM_SENT, SENT_DIM)

    n_hist = B * HIST
    n_cand = B * CAND
    batch = {
        "x_hist_text": jax.random.randint(k_ht, (n_hist, T), 1, VOCAB, jnp.int32),
        "x_cand_text": jax.random.randint(k_ct, (n_cand, T), 1, VOCAB, jnp.int32),
        "x_hist_sentiment": jax.random.randint(k_hs, (n_hist,), 0, NUM_SENT, jnp.int32),
        "x_cand_sentiment": jax.random.randint(k_cs, (n_cand,), 0, NUM_SENT, jnp.int32),
        "batch_size": B,
        "hist_per_user": HIST,
        "cand_per_user": CAND,
    }

    outputs = generator_forward(params, batch)
    outputs = jax.block_until_ready(outputs)

    combined_scores, bias_free_scores, loss_orth, clicked_vec, cand_vec = outputs
    assert combined_scores.shape == (B, CAND)
    assert bias_free_scores.shape == (B, CAND)
    assert loss_orth.shape == ()
    assert clicked_vec.shape == (n_hist, D)
    assert cand_vec.shape == (n_cand, D)
    assert bool(jnp.all(jnp.isfinite(combined_scores)))
    assert bool(jnp.all(jnp.isfinite(bias_free_scores)))
    assert bool(jnp.isfinite(loss_orth))
    print("KERNEL_OK")
</pallas_src>

<mosaic_0001>
module attributes {stable_mosaic.version = 11 : i64} {
  func.func @_news_item_kernel(%arg0: i32, %arg1: memref<1x8x1xi32, #tpu.memory_space<vmem>>, %arg2: memref<50x32xf32, #tpu.memory_space<vmem>>, %arg3: memref<32x16xf32, #tpu.memory_space<vmem>>, %arg4: memref<1x16xf32, #tpu.memory_space<vmem>>, %arg5: memref<1x16xf32, #tpu.memory_space<vmem>>, %arg6: memref<1x1x32xf32, #tpu.memory_space<vmem>>) attributes {dimension_semantics = [#tpu.dimension_semantics<parallel>], iteration_bounds = array<i64: 14>, scalar_prefetch = 0 : i64, scratch_operands = 0 : i64, tpu.core_type = #tpu.core_type<tc>, window_params = [{transform_indices = @transform_0, window_bounds = array<i64: 1, 8, 1>}, {pipeline_mode = #tpu.pipeline_mode<synchronous>, transform_indices = @transform_1, window_bounds = array<i64: 50, 32>}, {pipeline_mode = #tpu.pipeline_mode<synchronous>, transform_indices = @transform_2, window_bounds = array<i64: 32, 16>}, {pipeline_mode = #tpu.pipeline_mode<synchronous>, transform_indices = @transform_3, window_bounds = array<i64: 1, 16>}, {pipeline_mode = #tpu.pipeline_mode<synchronous>, transform_indices = @transform_4, window_bounds = array<i64: 1, 16>}, {transform_indices = @transform_5, window_bounds = array<i64: 1, 1, 32>}]} {
    %c0 = arith.constant 0 : index
    %c0_0 = arith.constant 0 : index
    %c0_1 = arith.constant 0 : index
    %0 = vector.load %arg1[%c0, %c0_0, %c0_1] : memref<1x8x1xi32, #tpu.memory_space<vmem>>, vector<1x8x1xi32>
    %1 = vector.shape_cast %0 : vector<1x8x1xi32> to vector<8x1xi32>
    %2 = tpu.iota {dimensions = array<i32: 1>} : vector<8x50xi32>
    %3 = vector.broadcast %1 : vector<8x1xi32> to vector<8x50xi32>
    %4 = arith.cmpi eq, %3, %2 : vector<8x50xi32>
    %5 = arith.extui %4 : vector<8x50xi1> to vector<8x50xi32>
    %6 = arith.sitofp %5 : vector<8x50xi32> to vector<8x50xf32>
    %c0_2 = arith.constant 0 : index
    %c0_3 = arith.constant 0 : index
    %7 = vector.load %arg2[%c0_2, %c0_3] : memref<50x32xf32, #tpu.memory_space<vmem>>, vector<50x32xf32>
    %cst = arith.constant dense<0.000000e+00> : vector<8x32xf32>
    %8 = tpu.matmul %6, %7, %cst {dimension_numbers = #tpu.dot_dimension_numbers<[1], [0], [0], [1], [0, 0, 1, 1], [], []>} : vector<8x50xf32>, vector<50x32xf32>, vector<8x32xf32> -> vector<8x32xf32>
    %c0_4 = arith.constant 0 : index
    %c0_5 = arith.constant 0 : index
    %9 = vector.load %arg3[%c0_4, %c0_5] : memref<32x16xf32, #tpu.memory_space<vmem>>, vector<32x16xf32>
    %cst_6 = arith.constant dense<0.000000e+00> : vector<8x16xf32>
    %10 = tpu.matmul %8, %9, %cst_6 {dimension_numbers = #tpu.dot_dimension_numbers<[1], [0], [0], [1], [0, 0, 1, 1], [], []>} : vector<8x32xf32>, vector<32x16xf32>, vector<8x16xf32> -> vector<8x16xf32>
    %c0_7 = arith.constant 0 : index
    %c0_8 = arith.constant 0 : index
    %11 = vector.load %arg4[%c0_7, %c0_8] : memref<1x16xf32, #tpu.memory_space<vmem>>, vector<1x16xf32>
    %12 = vector.broadcast %11 : vector<1x16xf32> to vector<8x16xf32>
    %13 = arith.addf %10, %12 : vector<8x16xf32>
    %14 = math.tanh %13 : vector<8x16xf32>
    %c0_9 = arith.constant 0 : index
    %c0_10 = arith.constant 0 : index
    %15 = vector.load %arg5[%c0_9, %c0_10] : memref<1x16xf32, #tpu.memory_space<vmem>>, vector<1x16xf32>
    %16 = vector.broadcast %15 : vector<1x16xf32> to vector<8x16xf32>
    %17 = arith.mulf %14, %16 : vector<8x16xf32>
    %cst_11 = arith.constant dense<0.000000e+00> : vector<8xf32>
    %18 = vector.multi_reduction <add>, %17, %cst_11 [1] : vector<8x16xf32> to vector<8xf32>
    %19 = vector.shape_cast %18 : vector<8xf32> to vector<8x1xf32>
    %cst_12 = arith.constant dense<0xFF800000> : vector<1xf32>
    %20 = vector.multi_reduction <maximumf>, %19, %cst_12 [0] : vector<8x1xf32> to vector<1xf32>
    %21 = vector.shape_cast %20 : vector<1xf32> to vector<1x1xf32>
    %22 = vector.broadcast %21 : vector<1x1xf32> to vector<8x1xf32>
    %23 = arith.subf %19, %22 : vector<8x1xf32>
    %24 = math.exp %23 : vector<8x1xf32>
    %cst_13 = arith.constant dense<0.000000e+00> : vector<1xf32>
    %25 = vector.multi_reduction <add>, %24, %cst_13 [0] : vector<8x1xf32> to vector<1xf32>
    %26 = vector.shape_cast %25 : vector<1xf32> to vector<1x1xf32>
    %27 = vector.broadcast %26 : vector<1x1xf32> to vector<8x1xf32>
    %28 = arith.divf %24, %27 : vector<8x1xf32>
    %29 = vector.broadcast %28 : vector<8x1xf32> to vector<8x32xf32>
    %30 = arith.mulf %29, %8 : vector<8x32xf32>
    %cst_14 = arith.constant dense<0.000000e+00> : vector<32xf32>
    %31 = vector.multi_reduction <add>, %30, %cst_14 [0] : vector<8x32xf32> to vector<32xf32>
    %32 = vector.shape_cast %31 : vector<32xf32> to vector<1x32xf32>
    %c0_15 = arith.constant 0 : index
    %c0_16 = arith.constant 0 : index
    %c0_17 = arith.constant 0 : index
    %33 = vector.load %arg6[%c0_15, %c0_16, %c0_17] : memref<1x1x32xf32, #tpu.memory_space<vmem>>, vector<1x1x32xf32>
    %34 = vector.shape_cast %33 : vector<1x1x32xf32> to vector<1x32xf32>
    %35 = vector.shape_cast %32 : vector<1x32xf32> to vector<1x1x32xf32>
    tpu.vector_store %arg6[%c0_15, %c0_16, %c0_17], %35 {strides = array<i32>} : memref<1x1x32xf32, #tpu.memory_space<vmem>>, vector<1x1x32xf32>,
    return
  }
  func.func @transform_0(%arg0: i32) -> (i32, i32, i32) {
    %c0_i32 = arith.constant 0 : i32
    %c0_i32_0 = arith.constant 0 : i32
    %c0_i32_1 = arith.constant 0 : i32
    return %arg0, %c0_i32, %c0_i32_0 : i32, i32, i32
  }
  func.func @transform_1(%arg0: i32) -> (i32, i32) {
    %c0_i32 = arith.constant 0 : i32
    %c0_i32_0 = arith.constant 0 : i32
    %c0_i32_1 = arith.constant 0 : i32
    return %c0_i32, %c0_i32_0 : i32, i32
  }
  func.func @transform_2(%arg0: i32) -> (i32, i32) {
    %c0_i32 = arith.constant 0 : i32
    %c0_i32_0 = arith.constant 0 : i32
    %c0_i32_1 = arith.constant 0 : i32
    return %c0_i32, %c0_i32_0 : i32, i32
  }
  func.func @transform_3(%arg0: i32) -> (i32, i32) {
    %c0_i32 = arith.constant 0 : i32
    %c0_i32_0 = arith.constant 0 : i32
    %c0_i32_1 = arith.constant 0 : i32
    return %c0_i32, %c0_i32_0 : i32, i32
  }
  func.func @transform_4(%arg0: i32) -> (i32, i32) {
    %c0_i32 = arith.constant 0 : i32
    %c0_i32_0 = arith.constant 0 : i32
    %c0_i32_1 = arith.constant 0 : i32
    return %c0_i32, %c0_i32_0 : i32, i32
  }
  func.func @transform_5(%arg0: i32) -> (i32, i32, i32) {
    %c0_i32 = arith.constant 0 : i32
    %c0_i32_0 = arith.constant 0 : i32
    %c0_i32_1 = arith.constant 0 : i32
    return %arg0, %c0_i32, %c0_i32_0 : i32, i32, i32
  }
}

</mosaic_0001>

<bundles_post_ra>
// kernel: tpu_custom_call.1
= control target key start
LH: loop header
LB: loop body
LE: loop exit
PB: predicated region body
PF: predicated region fallthrough
CT: control target
= control target key end

     0   :  { %10 = vsyncpa [#allocation3], 0  ;;  %s866_s0 = inlined_call_operand.vmem [shape: s32[14,8,1], index: 0, kind: input, shape index: {}]   ;;  %s867_s1 = inlined_call_operand.vmem [shape: f32[50,32], index: 1, kind: input, shape index: {}]   ;;  %s868_s2 = inlined_call_operand.vmem [shape: f32[32,16], index: 2, kind: input, shape index: {}]   ;;  %s869_s3 = inlined_call_operand.vmem [shape: f32[1,16], index: 3, kind: input, shape index: {}]   ;;  %s870_s4 = inlined_call_operand.vmem [shape: f32[1,16], index: 4, kind: input, shape index: {}]   ;;  %s871_s5 = inlined_call_operand.hbm [shape: f32[14,1,32], index: 5, kind: output, shape index: {}]  }
   0x1   :  { %12 = vsyncpa [#allocation3 + $0x1], 0  ;;  %s725_s18 = smov 0   ;;  %s727_s19 = smov 0  }
   0x2   :  { %s729_s20 = smov 0   ;;  %s731_s21 = smov 0  }
   0x3 LB: > { %s746_s22 = sadd.s32 4294967295, %s688_s21   ;;  %s506_s23 = sadd.s32 4294967294, %s688_s21   ;;  %s688_s21 = sphi %s731_s21, %s877_s21   ;;  %s684_s20 = sphi %s729_s20, %s876_s20   ;;  %s680_s19 = sphi %s727_s19, %s875_s19   ;;  %s676_s18 = sphi %s725_s18, %s874_s18  }
   0x4   : > { %s750_s24 = sadd.s32 1, %s688_s21   ;;  %s135_s25 = sadd.s32 1, %s684_s20 }
   0x5   : > { %s132_s26 = ssub.s32 %s688_s21, %s750_s24  ;;  %p145_p0 = scmp.ne.s32.totalorder %s684_s20, %s680_s19 }
   0x6   : > { %p133_p1 = scmp.eq.s32.totalorder %s132_s26, 0  ;;  %p146_p2 = scmp.eq.s32.totalorder %s746_s22, 13 }
   0x7   : > { %p151_p3 = scmp.ne.s32.totalorder %s680_s19, %s676_s18  ;;  %p152_p4 = scmp.eq.s32.totalorder %s506_s23, 13 }
   0x8   : > { %s761_s27 = scalar_select %p133_p1, %s684_s20, %s135_s25  }
   0x9   : > { %p763_p5 = por %p146_p2, %p145_p0  ;;  %p767_p6 = por %p152_p4, %p151_p3 }
   0xa   : > { %p509_p7 = scmp.ge.s32.totalorder %s688_s21, 1  ;;  %p189_p8 = scmp.lt.s32.totalorder %s688_s21, 15 }
   0xc   : > { %p190_p9 = pnand %p509_p7, %p189_p8 }
   0xd   : > { %p215_p10 = scmp.lt.s32.totalorder (!%p190_p9), %s746_s22, 13  ;;  %v228_v0 = vld [vmem:[%s867_s1] sm:$0xff] (!%p190_p9)  ;;  %v229_v1 = vld [vmem:[%s867_s1 + $0x8] sm:$0xff] (!%p190_p9)  ;;  %v230_v2 = vld [vmem:[%s867_s1 + $0x10] sm:$0xff] (!%p190_p9)  ;;  %v690_v3 = vmov (!%p190_p9), 0   ;;  %v691_v4 = vmov (!%p190_p9), 0.0|0.0   ;;  %v220_v20 = vlaneseq (!%p190_p9) }
   0xe   : > { %193 = sbr.rel (%p190_p9) target bundleno = 819 (0x333), region = 40  ;;  %619 = vset.pattern.permute.xlu0 (!%p190_p9), %v690_v3  ;;  %561 = vmatprep.subr.bf16.mxu0 (!%p190_p9), %v691_v4  ;;  %v562_v5 = vpack.c.bf16 (!%p190_p9), %v229_v1, %v228_v0  ;;  %v231_v6 = vld [vmem:[%s867_s1 + $0x18] sm:$0xff] (!%p190_p9)  ;;  %v232_v8 = vld [vmem:[%s867_s1 + $0x20] sm:$0xff] (!%p190_p9)  ;;  %v233_v9 = vld [vmem:[%s867_s1 + $0x28] sm:$0xff] (!%p190_p9)  ;;  %vm692_vm0 = vmmov (!%p190_p9), 0   ;;  %v693_v12 = vmov (!%p190_p9), 0.0  }
   0xf   : > { %570 = vmatprep.subr.bf16.mxu1 (!%p190_p9), %v691_v4  ;;  %v565_v7 = vpack.c.bf16 (!%p190_p9), %v231_v6, %v230_v2  ;;  %v568_v11 = vpack.c.bf16 (!%p190_p9), %v233_v9, %v232_v8  ;;  %547 = vmatprep.mubr.msk.f32.mxu0 (!%p190_p9), %vm692_vm0, %v693_v12  ;;  %v313_v13 = vld [vmem:[%s868_s2] sm:$0xff] (!%p190_p9)  ;;  %v314_v14 = vld [vmem:[%s868_s2 + $0x8] sm:$0xff] (!%p190_p9)  ;;  %v315_v15 = vld [vmem:[%s868_s2 + $0x10] sm:$0xff] (!%p190_p9)  ;;  %vm239_vm1 = vcmask (!%p190_p9), 1041408   ;;  %v221_v21 = vand.u32 (!%p190_p9), 127, %v220_v20  ;;  %s213_s26 = sand.u32 (!%p190_p9), 1, %s680_s19  }
  0x10   : > { %563 = vmatpush3.bf16.msra.mxu0 (!%p190_p9), %v562_v5  ;;  %558 = vmatprep.mubr.msk.f32.mxu1 (!%p190_p9), %vm692_vm0, %v693_v12  ;;  %v571_v16 = vpack.c.bf16 (!%p190_p9), %v314_v14, %v313_v13  ;;  %v316_v17 = vld [vmem:[%s868_s2 + $0x18] sm:$0xff] (!%p190_p9)  ;;  %v234_v18 = vld [vmem:[%s867_s1 + $0x30] sm:$0x3] (!%p190_p9)  ;;  %vm235_vm2 = vcmask (!%p190_p9), 408576   ;;  %vm324_vm4 = vcmask (!%p190_p9), 261120   ;;  %vm407_vm5 = vcmask (!%p190_p9), 130048  }
  0x11   : > { %564 = vmatprep.subr.bf16.mxu0 (!%p190_p9), %v691_v4  ;;  %v574_v19 = vpack.c.bf16 (!%p190_p9), %v316_v17, %v315_v15  ;;  %v514_v26 = vld [vmem:[%s869_s3] ss:$0 sm:$0xff] (!%p190_p9)  ;;  %s214_s6 = scalar_lea.vmem (!%p190_p9), [#allocation2], %s213_s26  ;;  %vm436_vm6 = vcmask (!%p190_p9), 253952   ;;  %s439_s11 = scalar_lea.sflag (!%p190_p9), [#allocation3], %s213_s26 }
  0x12   : > { %572 = vmatpush3.bf16.msra.mxu1 (!%p190_p9), %v571_v16  ;;  %v516_v30 = vld [vmem:[%s870_s4] ss:$0 sm:$0xff] (!%p190_p9)  ;;  %s451_s7 = sshll.u32 (!%p190_p9), %s214_s6, 4  ;;  %s826_s7 = int_to_ptr.vmem [resolvable:$true] %s451_s7 }
  0x13   : > { %573 = vmatprep.subr.bf16.mxu1 (!%p190_p9), %v691_v4  ;;  %s626_s12 = scalar_lea.vmem (!%p190_p9), %s826_s7, 16 }
  0x14   : > { %566 = vmatpush3.bf16.msra.mxu0 (!%p190_p9), %v565_v7  ;;  %p627_p11 = scmp.ne.s32.totalorder (!%p190_p9), %s826_s7, %s626_s12 }
  0x15   : > { %s216_s13 = scalar_select %p215_p10, %s746_s22, 13  ;;  %567 = vmatprep.subr.bf16.mxu0 %v691_v4 }
  0x16   : > { %575 = vmatpush3.bf16.msra.mxu1 %v574_v19  ;;  %p628_p12 = pnand %p627_p11, %p763_p5 }
  0x17   : > { %s510_s14 = sshll.u32 %s216_s13, 3 }
  0x18   : > { %s218_s30 = scalar_lea.vmem %s866_s0, %s510_s14  ;;  %569 = vmatpush3.bf16.msra.mxu0 %v568_v11  ;;  %p629_p13 = pneg %p628_p12 }
  0x19   : > { %v219_v10 = vld [vmem:[%s218_s30] sm:$0xff]  ;;  %545 = vmatprep.subr.mxu0 %v693_v12  ;;  %s517_s30 = sshll.u32 %s746_s22, 4  ;;  %s694_s22 = smov [#allocation2]  }
  0x1a   : > { %223 = vperm.xlu0 %619, %v219_v10   ;;  %s824_s10 = scalar_lea.hbm %s871_s5, %s517_s30  ;;  %s630_s13 = sshll.u32 %s694_s22, 4  ;;  %s631_s13 = int_to_ptr.vmem [resolvable:$false] %s630_s13 }
  0x1b   : > { %s632_s14 = scalar_lea.vmem %s631_s13, 32  ;;  %p633_p0 = scmp.lt.s32.totalorder %s826_s7, %s631_s13 }
  0x1c   : > { %546 = vmatpush3.msk.msra.mxu0 %vm239_vm1, %v234_v18  ;;  %p634_p1 = scmp.lt.s32.totalorder %s632_s14, %s626_s12 }
  0x1e   : > { %p635_p2 = por %p634_p1, %p633_p0 }
  0x20   : > { %p636_p3 = pnand %p635_p2, %p629_p13 }
  0x99   : > { %v224_v22 = vpop.permute.xlu0 %223 }
  0x9a   : > { %vm225_vm3 = vcmp.eq.s32.totalorder %v224_v22, %v221_v21 }
  0x9b   : > { %v511_v23 = vsel %vm225_vm3, 1.0, %v693_v12 }
  0x9c   : > { %548 = vmatmul.mubr.msk.f32.vlgmr.msra.gmra.mrb[0].mxu0 %vm235_vm2, %v511_v23 }
 0x16f   : > { %v309_v24 = vpop.f32.mrb[0].mxu0 }
 0x170   : > { %v549_v25 = vpop.f32.mrb[1].mxu0  ;;  %559 = vmatmul.mubr.msk.f32.vlgmr.msra.gmra.mrb[0].mxu1 %vm324_vm4, %v309_v24 }
 0x243   : > { %v394_v27 = vpop.f32.mrb[0].mxu1 }
 0x244   : > { %v395_v28 = vadd.f32 %v514_v26, %v394_v27  ;;  %v560_v29 = vpop.f32.mrb[1].mxu1 }
 0x246   : > { %620 = vtanh.f32 %v395_v28 }
 0x250   : > { %v621_v31 = vpop.eup %620 }
 0x251   : > { %v406_v32 = vmul.f32 %v621_v31, %v516_v30 }
 0x253   : > { %v408_v33 = vsel %vm407_vm5, %v406_v32, 0.0 }
 0x254   : > { %409 = vadd.xlane.f32.xlu0 %v408_v33 }
 0x2e1   : > { %v410_v34 = vpop.xlane.xlu0 %409 }
 0x2e2   : > { %v411_v35 = vrot.slane %v410_v34, 4 }
 0x2e4   : > { %v412_v36 = vmax.f32 %v410_v34, %v411_v35 }
 0x2e6   : > { %v413_v37 = vrot.slane %v412_v36, 2 }
 0x2e8   : > { %v414_v38 = vmax.f32 %v412_v36, %v413_v37 }
 0x2ea   : > { %v415_v39 = vrot.slane %v414_v38, 1 }
 0x2ec   : > { %v416_v40 = vmax.f32 %v414_v38, %v415_v39 }
 0x2ee   : > { %v417_v41 = vsub.f32 %v410_v34, %v416_v40 }
 0x2f0   : > { %v418_v42 = vmul.f32 1.442695, %v417_v41 }
 0x2f2   : > { %622 = vpow2.f32 %v418_v42 }
 0x2fc   : > { %v623_v43 = vpop.eup %622 }
 0x2fd   : > { %v420_v44 = vrot.slane %v623_v43, 4 }
 0x2ff   : > { %v421_v45 = vadd.f32 %v623_v43, %v420_v44 }
 0x301   : > { %v422_v46 = vrot.slane %v421_v45, 2 }
 0x303   : > { %v423_v47 = vadd.f32 %v422_v46, %v421_v45 }
 0x305   : > { %v424_v48 = vrot.slane %v423_v47, 1 }
 0x307   : > { %v425_v49 = vadd.f32 %v424_v48, %v423_v47 }
 0x309   : > { %624 = vrcp.f32 %v425_v49 }
 0x313   : > { %v625_v50 = vpop.eup %624 }
 0x314   : > { %v427_v51 = vmul.f32 %v625_v50, %v623_v43 }
 0x316   : > { %v428_v52 = vmul.f32 %v427_v51, %v309_v24 }
 0x318   : > { %v429_v53 = vsel %vm324_vm4, %v428_v52, 0.0 }
 0x319   : > { %v430_v54 = vrot.slane %v429_v53, 4 }
 0x31b   : > { %v431_v55 = vadd.f32 %v430_v54, %v429_v53 }
 0x31d   : > { %v432_v56 = vrot.slane %v431_v55, 2 }
 0x31f   : > { %v433_v57 = vadd.f32 %v432_v56, %v431_v55 }
 0x321   : > { %v434_v58 = vrot.slane %v433_v57, 1 }
 0x323   : > { %v435_v59 = vadd.f32 %v434_v58, %v433_v57 }
 0x325   : > { %437 = vst.msk [vmem:[%s214_s6] sm:$0x1] %vm436_vm6, %v435_v59 }
 0x326   : > { %639 = shalt.err (!%p636_p3)
}
 0x327   : > { %s640_s15 = scalar_lea.hbm %s824_s10, 16  ;;  %s644_s23 = scalar_lea.hbm %s871_s5, 224 }
 0x328   : > { %p641_p4 = scmp.ne.s32.totalorder %s824_s10, %s640_s15  ;;  %p645_p9 = scmp.lt.u32.totalorder %s824_s10, %s871_s5 }
 0x329   : > { %p646_p10 = scmp.lt.u32.totalorder %s644_s23, %s640_s15  ;;  %p648_p12 = scmp.lt.u32.totalorder %s640_s15, %s824_s10 }
 0x32a   : > { %p642_p7 = pnand %p641_p4, %p763_p5 }
 0x32b   : > { %p647_p11 = por %p646_p10, %p645_p9 }
 0x32c   : > { %p643_p8 = pneg %p642_p7 }
 0x32d   : > { %p649_p13 = por %p648_p12, %p647_p11 }
 0x32f   : > { %p650_p0 = pnand %p649_p13, %p643_p8 }
 0x331   : > { %653 = shalt.err (!%p650_p0)
}
 0x332   : > { %576 = dma.vmem_to_hbm [thread:$0]  (%p763_p5), %s826_s7, 16, %s824_s10, %s439_s11  }
 0x333 PF: > { %p582_p1 = scmp.ge.s32.totalorder %s688_s21, 2  ;;  %s463_s30 = sand.u32 1, %s676_s18  }
 0x334   : > { %s464_s6 = scalar_lea.sflag [#allocation3], %s463_s30 }
 0x335   : > { %p579_p2 = pnand %p582_p1, %p767_p6 }
 0x337   : > { %671 = dma.done.wait (!%p579_p2), %s464_s6, 16  }
 0x338   : > { %673 = vsyncadd (!%p579_p2), %s464_s6, 4294967280  ;;  %p15_p3 = scmp.ge.s32.totalorder %s750_s24, 16   ;;  %s874_s18 = smov %s680_s19 }
 0x339   : > { %s875_s19 = smov %s684_s20  ;;  %s876_s20 = smov %s761_s27 }
 0x33a   : > { %s877_s21 = smov %s750_s24  ;;  %17 = sbr.rel (!%p15_p3) target bundleno = 3 (0x3), region = 75 }
 0x341   :  { %468 = vsyncpa [#allocation3], 1 }
 0x342   :  { %470 = vsyncpa [#allocation3 + $0x1], 1 }

</bundles_post_ra>
